<compile_context>
chip_gen: v7x
topology: tpu7x:2x2x1
jax: 0.10.0
libtpu: 0.0.40
codegen_flags: <defaults>
</compile_context>

<pallas_src>
import jax
import jax.numpy as jnp
import numpy as np
from jax.experimental import pallas as pl
from jax.experimental.pallas import tpu as pltpu


def _cdiv(a, b):
    return (a + b - 1) // b


def _round_up(x, m):
    return _cdiv(x, m) * m


def cosine_embedding_kernel(taus_ref, ipi_ref, w_ref, b_ref, out_ref):
    # taus_ref: (TM, 1)  ipi_ref: (1, K)  w_ref: (K, E)  b_ref: (1, E)  out_ref: (TM, E)
    cosines = jnp.cos(taus_ref[...] * ipi_ref[...])                        # (TM, K) VPU+EUP
    h = jnp.dot(cosines, w_ref[...], preferred_element_type=jnp.float32)   # (TM, E) MXU
    out_ref[...] = jnp.maximum(h + b_ref[...], 0.0).astype(out_ref.dtype)  # bias + ReLU


def _choose_row_tile(M, tm_max):
    """Row tile at f32-sublane (8) granularity; guarantee >=2 (even) grid steps
    when M > 256 so v7x's two TensorCores both get work under ("parallel",)."""
    TM = min(tm_max, _round_up(M, 8))
    steps = _cdiv(M, TM)
    if M > 256:
        if steps == 1:
            steps = 2
        elif steps % 2 == 1:
            steps += 1
        TM = min(tm_max, _round_up(_cdiv(M, steps), 8))
        steps = _cdiv(M, TM)
    return TM, steps


def cosine_embedding_forward(taus, weight_t, bias, *, tm=1024, out_dtype=jnp.float32):
    """taus: (B, N) f32; weight_t: (K, E) f32 (transpose of torch Linear weight);
    bias: (E,) f32.  Returns (B, N, E) in out_dtype."""
    B, N = taus.shape
    K, E = weight_t.shape
    M = B * N

    TM, steps = _choose_row_tile(M, tm)
    M_in = steps * TM  # only the tiny taus input is padded; output stays (M, E)

    taus2d = taus.reshape(M, 1).astype(jnp.float32)
    if M_in != M:
        # Keep the overhanging last input block defined (cos(0)=1); those rows are
        # clipped by Pallas on output writeback, so no post-kernel slice is needed.
        taus2d = jnp.pad(taus2d, ((0, M_in - M), (0, 0)))

    ipi = (np.pi * jnp.arange(1, K + 1, dtype=jnp.float32)).reshape(1, K)
    bias2d = bias.reshape(1, E).astype(jnp.float32)

    out = pl.pallas_call(
        cosine_embedding_kernel,
        out_shape=jax.ShapeDtypeStruct((M, E), out_dtype),
        grid=(steps,),
        in_specs=[
            pl.BlockSpec((TM, 1), lambda i: (i, 0)),   # taus rows, tiled over grid
            pl.BlockSpec((1, K), lambda i: (0, 0)),    # i*pi, resident
            pl.BlockSpec((K, E), lambda i: (0, 0)),    # weight, resident
            pl.BlockSpec((1, E), lambda i: (0, 0)),    # bias, resident
        ],
        out_specs=pl.BlockSpec((TM, E), lambda i: (i, 0)),
        compiler_params=pltpu.CompilerParams(
            dimension_semantics=("parallel",),
            vmem_limit_bytes=32 * 1024 * 1024,
        ),
        cost_estimate=pl.CostEstimate(
            flops=2 * M * K * E,
            transcendentals=M * K,
            bytes_accessed=4 * (M_in + K * E + E)
            + M * E * jnp.dtype(out_dtype).itemsize,
        ),
    )(taus2d, ipi, weight_t.astype(jnp.float32), bias2d)

    return out.reshape(B, N, E)


def init_params(key, num_cosines=64, embedding_dim=512):
    # Mimic torch.nn.Linear default init: U(-1/sqrt(fan_in), 1/sqrt(fan_in)).
    k_w, k_b = jax.random.split(key)
    bound = 1.0 / np.sqrt(num_cosines)
    # torch Linear weight is (E, K); we store the transpose (K, E) for cosines @ W.T.
    weight_t = jax.random.uniform(
        k_w, (num_cosines, embedding_dim), dtype=jnp.float32, minval=-bound, maxval=bound
    )
    bias = jax.random.uniform(
        k_b, (embedding_dim,), dtype=jnp.float32, minval=-bound, maxval=bound
    )
    return weight_t, bias


if __name__ == "__main__":
    num_cosines = 64
    embedding_dim = 512
    B, N = 2, 8  # small quantile-fraction batch

    key = jax.random.PRNGKey(0)
    k_tau, k_param = jax.random.split(key)

    taus = jax.random.uniform(k_tau, (B, N), dtype=jnp.float32)  # taus in [0, 1)
    weight_t, bias = init_params(k_param, num_cosines, embedding_dim)

    out = jax.block_until_ready(cosine_embedding_forward(taus, weight_t, bias))

    # Pure-JAX reference (matches the PyTorch forward: arange(1, K+1) * pi).
    i_pi = np.pi * jnp.arange(1, num_cosines + 1, dtype=jnp.float32).reshape(1, 1, num_cosines)
    cosines = jnp.cos(taus.reshape(B, N, 1) * i_pi).reshape(B * N, num_cosines)
    ref = jnp.maximum(cosines @ weight_t + bias, 0.0).reshape(B, N, embedding_dim)

    assert out.shape == (B, N, embedding_dim)
    assert jnp.allclose(out, ref, atol=1e-4, rtol=1e-4)

    print("KERNEL_OK")
</pallas_src>

<mosaic_0001>
module attributes {stable_mosaic.version = 11 : i64} {
  func.func @cosine_embedding_kernel(%arg0: i32, %arg1: memref<16x1xf32, #tpu.memory_space<vmem>>, %arg2: memref<1x64xf32, #tpu.memory_space<vmem>>, %arg3: memref<64x512xf32, #tpu.memory_space<vmem>>, %arg4: memref<1x512xf32, #tpu.memory_space<vmem>>, %arg5: memref<16x512xf32, #tpu.memory_space<vmem>>) attributes {dimension_semantics = [#tpu.dimension_semantics<parallel>], iteration_bounds = array<i64: 1>, scalar_prefetch = 0 : i64, scratch_operands = 0 : i64, tpu.core_type = #tpu.core_type<tc>, window_params = [{transform_indices = @transform_0, window_bounds = array<i64: 16, 1>}, {pipeline_mode = #tpu.pipeline_mode<synchronous>, transform_indices = @transform_1, window_bounds = array<i64: 1, 64>}, {pipeline_mode = #tpu.pipeline_mode<synchronous>, transform_indices = @transform_2, window_bounds = array<i64: 64, 512>}, {pipeline_mode = #tpu.pipeline_mode<synchronous>, transform_indices = @transform_3, window_bounds = array<i64: 1, 512>}, {transform_indices = @transform_4, window_bounds = array<i64: 16, 512>}]} {
    %c0 = arith.constant 0 : index
    %c0_0 = arith.constant 0 : index
    %0 = vector.load %arg1[%c0, %c0_0] : memref<16x1xf32, #tpu.memory_space<vmem>>, vector<16x1xf32>
    %c0_1 = arith.constant 0 : index
    %c0_2 = arith.constant 0 : index
    %1 = vector.load %arg2[%c0_1, %c0_2] : memref<1x64xf32, #tpu.memory_space<vmem>>, vector<1x64xf32>
    %2 = vector.broadcast %0 : vector<16x1xf32> to vector<16x64xf32>
    %3 = vector.broadcast %1 : vector<1x64xf32> to vector<16x64xf32>
    %4 = arith.mulf %2, %3 : vector<16x64xf32>
    %5 = math.cos %4 : vector<16x64xf32>
    %c0_3 = arith.constant 0 : index
    %c0_4 = arith.constant 0 : index
    %6 = vector.load %arg3[%c0_3, %c0_4] : memref<64x512xf32, #tpu.memory_space<vmem>>, vector<64x512xf32>
    %cst = arith.constant dense<0.000000e+00> : vector<16x512xf32>
    %7 = tpu.matmul %5, %6, %cst {dimension_numbers = #tpu.dot_dimension_numbers<[1], [0], [0], [1], [0, 0, 1, 1], [], []>} : vector<16x64xf32>, vector<64x512xf32>, vector<16x512xf32> -> vector<16x512xf32>
    %c0_5 = arith.constant 0 : index
    %c0_6 = arith.constant 0 : index
    %8 = vector.load %arg4[%c0_5, %c0_6] : memref<1x512xf32, #tpu.memory_space<vmem>>, vector<1x512xf32>
    %9 = vector.broadcast %8 : vector<1x512xf32> to vector<16x512xf32>
    %10 = arith.addf %7, %9 : vector<16x512xf32>
    %cst_7 = arith.constant 0.000000e+00 : f32
    %11 = vector.broadcast %cst_7 : f32 to vector<16x512xf32>
    %12 = arith.maximumf %10, %11 : vector<16x512xf32>
    %c0_8 = arith.constant 0 : index
    %c0_9 = arith.constant 0 : index
    %13 = vector.load %arg5[%c0_8, %c0_9] : memref<16x512xf32, #tpu.memory_space<vmem>>, vector<16x512xf32>
    tpu.vector_store %arg5[%c0_8, %c0_9], %12 {strides = array<i32>} : memref<16x512xf32, #tpu.memory_space<vmem>>, vector<16x512xf32>,
    return
  }
  func.func @transform_0(%arg0: i32) -> (i32, i32) {
    %c0_i32 = arith.constant 0 : i32
    %c0_i32_0 = arith.constant 0 : i32
    return %arg0, %c0_i32 : i32, i32
  }
  func.func @transform_1(%arg0: i32) -> (i32, i32) {
    %c0_i32 = arith.constant 0 : i32
    %c0_i32_0 = arith.constant 0 : i32
    %c0_i32_1 = arith.constant 0 : i32
    return %c0_i32, %c0_i32_0 : i32, i32
  }
  func.func @transform_2(%arg0: i32) -> (i32, i32) {
    %c0_i32 = arith.constant 0 : i32
    %c0_i32_0 = arith.constant 0 : i32
    %c0_i32_1 = arith.constant 0 : i32
    return %c0_i32, %c0_i32_0 : i32, i32
  }
  func.func @transform_3(%arg0: i32) -> (i32, i32) {
    %c0_i32 = arith.constant 0 : i32
    %c0_i32_0 = arith.constant 0 : i32
    %c0_i32_1 = arith.constant 0 : i32
    return %c0_i32, %c0_i32_0 : i32, i32
  }
  func.func @transform_4(%arg0: i32) -> (i32, i32) {
    %c0_i32 = arith.constant 0 : i32
    %c0_i32_0 = arith.constant 0 : i32
    return %arg0, %c0_i32 : i32, i32
  }
}

</mosaic_0001>

<bundles_post_ra>
// kernel: tpu_custom_call.1
= control target key start
LH: loop header
LB: loop body
LE: loop exit
PB: predicated region body
PF: predicated region fallthrough
CT: control target
= control target key end

     0   :  { %9 = vsyncpa [#allocation3], 0  ;;  %s789_s0 = inlined_call_operand.vmem [shape: f32[16,1], index: 0, kind: input, shape index: {}]   ;;  %s790_s1 = inlined_call_operand.vmem [shape: f32[1,64], index: 1, kind: input, shape index: {}]   ;;  %s791_s2 = inlined_call_operand.hbm [shape: f32[64,512], index: 2, kind: input, shape index: {}]   ;;  %s792_s3 = inlined_call_operand.vmem [shape: f32[1,512], index: 3, kind: input, shape index: {}]   ;;  %s793_s4 = inlined_call_operand.hbm [shape: f32[16,512], index: 4, kind: output, shape index: {}]  }
   0x1   :  { %10 = vsyncpa [#allocation4], 0  ;;  %s629_s15 = smov [#allocation2]   ;;  %s581_s19 = scalar_lea.hbm %s791_s2, 4096 }
   0x2   :  { %s20_s16 = sshll.u32 %s629_s15, 4  ;;  %p582_p0 = scmp.ne.s32.totalorder %s791_s2, %s581_s19  ;;  %s21_s16 = int_to_ptr.vmem [resolvable:$true] %s20_s16 }
   0x3   :  { %p585_p1 = scmp.lt.u32.totalorder %s581_s19, %s791_s2 }
   0x5   :  { %p587_p2 = pnand %p585_p1, %p582_p0 }
   0x7   :  { %590 = shalt.err (!%p587_p2)
}
   0x8   :  { %s591_s24 = scalar_lea.vmem %s21_s16, 4096  ;;  %p596_p4 = scmp.lt.s32.totalorder %s21_s16, %s21_s16 }
   0x9   :  { %p592_p3 = scmp.ne.s32.totalorder %s21_s16, %s591_s24  ;;  %p597_p5 = scmp.lt.s32.totalorder %s591_s24, %s591_s24 }
   0xb   :  { %p598_p6 = por %p597_p5, %p596_p4 }
   0xd   :  { %p599_p7 = pnand %p598_p6, %p592_p3 }
   0xf   :  { %602 = shalt.err (!%p599_p7)
}
  0x10   :  { %s630_s25 = smov 512   ;;  %s631_s26 = smov 32  }
  0x11   :  { %26 = dma.hbm_to_vmem [thread:$0]  %s791_s2, 4096, %s21_s16, [#allocation3], %s630_s25, %s630_s25, %s631_s26  }
  0x12   :  { %625 = dma.done.wait [#allocation3], 4096  }
  0x13   :  { %626 = vsyncadd [#allocation3], 4294963200  ;;  %v632_v0 = vmov 0   ;;  %v32_v1 = vld [vmem:[%s789_s0] sm:$0xff]  ;;  %v33_v2 = vld [vmem:[%s789_s0 + $0x8] sm:$0xff]  ;;  %v633_v15 = vmov 0.0  }
  0x14   :  { %572 = vset.pattern.permute.xlu0 %v632_v0  ;;  %v260_v3 = vld [vmem:[#allocation2 + $0x8] sm:$0xff]  ;;  %v262_v5 = vld [vmem:[#allocation2 + $0x18] sm:$0xff]  ;;  %v259_v8 = vld [vmem:[#allocation2] sm:$0xff]  ;;  %384 = vmatprep.mubr.f32.mxu0 %v633_v15 }
  0x15   :  { %37 = vperm.xlu0 %572, %v32_v1   ;;  %v264_v4 = vld [vmem:[#allocation2 + $0x28] sm:$0xff]  ;;  %v266_v7 = vld [vmem:[#allocation2 + $0x38] sm:$0xff]  ;;  %v263_v9 = vld [vmem:[#allocation2 + $0x20] sm:$0xff]  ;;  %461 = vmatprep.mubr.f32.mxu1 %v633_v15 }
  0x16   :  { %v520_v6 = vpack.c.bf16 %v264_v4, %v260_v3  ;;  %v536_v10 = vpack.c.bf16 %v266_v7, %v262_v5  ;;  %v522_v11 = vpack.c.bf16 %v263_v9, %v259_v8  ;;  %v261_v12 = vld [vmem:[#allocation2 + $0x10] sm:$0xff]  ;;  %v268_v14 = vld [vmem:[#allocation2 + $0x48] sm:$0xff]  ;;  %v270_v18 = vld [vmem:[#allocation2 + $0x58] sm:$0xff]  ;;  %v634_v9 = vmov 683565275  }
  0x17   :  { %v265_v13 = vld [vmem:[#allocation2 + $0x30] sm:$0xff]  ;;  %v272_v17 = vld [vmem:[#allocation2 + $0x68] sm:$0xff]  ;;  %v274_v19 = vld [vmem:[#allocation2 + $0x78] sm:$0xff] }
  0x18   :  { %521 = vmatprep.subr.bf16.mxu0 %v520_v6  ;;  %v538_v16 = vpack.c.bf16 %v265_v13, %v261_v12  ;;  %537 = vmatprep.subr.bf16.mxu1 %v536_v10  ;;  %v524_v20 = vpack.c.bf16 %v272_v17, %v268_v14  ;;  %v540_v21 = vpack.c.bf16 %v274_v19, %v270_v18  ;;  %v267_v22 = vld [vmem:[#allocation2 + $0x40] sm:$0xff]  ;;  %v269_v24 = vld [vmem:[#allocation2 + $0x50] sm:$0xff]  ;;  %v276_v27 = vld [vmem:[#allocation2 + $0x88] sm:$0xff]  ;;  %v635_v13 = vmov 2475754826  }
  0x19   :  { %42 = vperm.xlu0 %572, %v33_v2   ;;  %523 = vmatpush1.bf16.msra.mxu0 %v522_v11  ;;  %v271_v23 = vld [vmem:[#allocation2 + $0x60] sm:$0xff]  ;;  %v273_v26 = vld [vmem:[#allocation2 + $0x70] sm:$0xff]  ;;  %v280_v28 = vld [vmem:[#allocation2 + $0xa8] sm:$0xff]  ;;  %v637_v18 = vmov 2102212464  }
  0x1a   :  { %539 = vmatpush1.bf16.msra.mxu1 %v538_v16  ;;  %v526_v25 = vpack.c.bf16 %v271_v23, %v267_v22  ;;  %525 = vmatprep.subr.bf16.mxu0 %v524_v20  ;;  %v542_v29 = vpack.c.bf16 %v273_v26, %v269_v24  ;;  %v528_v30 = vpack.c.bf16 %v280_v28, %v276_v27  ;;  %v278_v31 = vld [vmem:[#allocation2 + $0x98] sm:$0xff]  ;;  %v275_v33 = vld [vmem:[#allocation2 + $0x80] sm:$0xff]  ;;  %v277_v36 = vld [vmem:[#allocation2 + $0x90] sm:$0xff]  ;;  %v636_v16 = vmov 2131351028  }
  0x1b   :  { %541 = vmatprep.subr.bf16.mxu1 %v540_v21  ;;  %v282_v32 = vld [vmem:[#allocation2 + $0xb8] sm:$0xff]  ;;  %v279_v35 = vld [vmem:[#allocation2 + $0xa0] sm:$0xff]  ;;  %v281_v37 = vld [vmem:[#allocation2 + $0xb0] sm:$0xff]  ;;  %v638_v20 = vmov 920167782  }
  0x1c   :  { %v544_v34 = vpack.c.bf16 %v282_v32, %v278_v31  ;;  %v530_v38 = vpack.c.bf16 %v279_v35, %v275_v33  ;;  %v284_v39 = vld [vmem:[#allocation2 + $0xc8] sm:$0xff]  ;;  %v286_v41 = vld [vmem:[#allocation2 + $0xd8] sm:$0xff]  ;;  %v546_v42 = vpack.c.bf16 %v281_v37, %v277_v36  ;;  %v283_v45 = vld [vmem:[#allocation2 + $0xc0] sm:$0xff]  ;;  %v639_v27 = vmov 1326507024  }
  0x1d   :  { %527 = vmatpush1.bf16.msra.mxu0 %v526_v25  ;;  %v288_v40 = vld [vmem:[#allocation2 + $0xe8] sm:$0xff]  ;;  %v290_v44 = vld [vmem:[#allocation2 + $0xf8] sm:$0xff]  ;;  %v287_v46 = vld [vmem:[#allocation2 + $0xe0] sm:$0xff] }
  0x1e   :  { %543 = vmatpush1.bf16.msra.mxu1 %v542_v29  ;;  %529 = vmatprep.subr.bf16.mxu0 %v528_v30  ;;  %v532_v43 = vpack.c.bf16 %v288_v40, %v284_v39  ;;  %v548_v47 = vpack.c.bf16 %v290_v44, %v286_v41  ;;  %v285_v48 = vld [vmem:[#allocation2 + $0xd0] sm:$0xff]  ;;  %v534_v50 = vpack.c.bf16 %v287_v46, %v283_v45  ;;  %v507_v52 = vld [vmem:[%s790_s1] ss:$0 sm:$0xff] }
  0x1f   :  { %545 = vmatprep.subr.bf16.mxu1 %v544_v34  ;;  %v289_v49 = vld [vmem:[#allocation2 + $0xf0] sm:$0xff] }
  0x20   :  { %v550_v51 = vpack.c.bf16 %v289_v49, %v285_v48 }
  0x21   :  { %531 = vmatpush1.bf16.msra.mxu0 %v530_v38 }
  0x22   :  { %547 = vmatpush1.bf16.msra.mxu1 %v546_v42  ;;  %533 = vmatprep.subr.bf16.mxu0 %v532_v43 }
  0x23   :  { %549 = vmatprep.subr.bf16.mxu1 %v548_v47 }
  0x25   :  { %535 = vmatpush1.bf16.msra.mxu0 %v534_v50 }
  0x26   :  { %551 = vmatpush1.bf16.msra.mxu1 %v550_v51 }
  0x94   :  { %v38_v53 = vpop.permute.xlu0 %37 }
  0x95   :  { %v692_v54 = vmul.f32 %v507_v52, %v38_v53 }
  0x97   :  { %v53_v55 = vand.u32 2147483647, %v692_v54  ;;  %v56_v56 = vand.u32 2139095040, %v692_v54  ;;  %vm55_vm14 = vcmp.lt.s32.totalorder %v692_v54, 0 }
  0x98   :  { %v43_v57 = vpop.permute.xlu0 %42 }
  0x99   :  { %v57_v58 = vshrl.u32 %v56_v56, 23  ;;  %v696_v59 = vmul.f32 %v507_v52, %v43_v57  ;;  %v60_v60 = vand.u32 8388607, %v53_v55  ;;  %vm54_vm15 = vcmp.le.f32.partialorder %v53_v55, 0.7853982 }
  0x9b   :  { %v508_v61 = vadd.s32 4294967169, %v57_v58  ;;  %v159_v62 = vand.u32 2139095040, %v696_v59  ;;  %v61_v0 = vor.u32 8388608, %v60_v60  ;;  %v156_v2 = vand.u32 2147483647, %v696_v59 }
  0x9d   :  { %v63_v63 = vadd.s32 1, %v508_v61  ;;  %v160_v1 = vshrl.u32 %v159_v62, 23  ;;  %v702_v7 = vshll.u32 %v61_v0, 8  ;;  %v163_v11 = vand.u32 8388607, %v156_v2 }
  0x9f   :  { %vm64_vm0 = vcmp.gt.s32.totalorder %v63_v63, 0  ;;  %v512_v4 = vadd.s32 4294967169, %v160_v1  ;;  %v164_v42 = vor.u32 8388608, %v163_v11 }
  0xa0   :  { %v65_v3 = vsel %vm64_vm0, %v63_v63, 0  ;;  %vm158_vm0 = vcmp.lt.s32.totalorder %v696_v59, 0 }
  0xa1   :  { %v66_v5 = vshrl.u32 %v65_v3, 5  ;;  %v67_v6 = vand.u32 31, %v65_v3  ;;  %v166_v12 = vadd.s32 1, %v512_v4  ;;  %v204_v57 = vshll.u32 %v164_v42, 8 }
  0xa3   :  { %v68_v8 = vsub.s32 32, %v67_v6  ;;  %v70_v10 = vshll.u32 %v634_v9, %v67_v6  ;;  %v73_v14 = vshll.u32 %v635_v13, %v67_v6  ;;  %v76_v17 = vshll.u32 %v636_v16, %v67_v6 }
  0xa4   :  { %v79_v19 = vshll.u32 %v637_v18, %v67_v6  ;;  %v82_v21 = vshll.u32 %v638_v20, %v67_v6  ;;  %vm85_vm1 = vcmp.lt.s32.totalorder %v66_v5, 1  ;;  %vm87_vm2 = vcmp.lt.s32.totalorder %v66_v5, 3 }
  0xa5   :  { %v71_v22 = vshrl.u32 %v635_v13, %v68_v8  ;;  %v74_v23 = vshrl.u32 %v636_v16, %v68_v8  ;;  %v77_v24 = vshrl.u32 %v637_v18, %v68_v8  ;;  %v69_v25 = vshrl.u32 %v634_v9, %v68_v8 }
  0xa6   :  { %v80_v26 = vshrl.u32 %v638_v20, %v68_v8  ;;  %v83_v28 = vshrl.u32 %v639_v27, %v68_v8  ;;  %vm167_vm3 = vcmp.gt.s32.totalorder %v166_v12, 0  ;;  %vm88_vm4 = vcmp.lt.s32.totalorder %v66_v5, 4 }
  0xa7   :  { %v72_v29 = vor.u32 %v71_v22, %v70_v10  ;;  %v75_v30 = vor.u32 %v74_v23, %v73_v14  ;;  %v78_v31 = vor.u32 %v77_v24, %v76_v17  ;;  %v168_v34 = vsel %vm167_vm3, %v166_v12, 0 }
  0xa8   :  { %v81_v32 = vor.u32 %v80_v26, %v79_v19  ;;  %v84_v33 = vor.u32 %v83_v28, %v82_v21  ;;  %vm86_vm5 = vcmp.lt.s32.totalorder %v66_v5, 2  ;;  %v170_v45 = vand.u32 31, %v168_v34 }
  0xa9   :  { %v89_v35 = vsel %vm85_vm1, %v69_v25, %v72_v29  ;;  %v90_v36 = vsel %vm88_vm4, %v78_v31, 2102212464  ;;  %v93_v37 = vsel %vm85_vm1, %v72_v29, %v75_v30  ;;  %v97_v38 = vsel %vm85_vm1, %v75_v30, %v78_v31 }
  0xaa   :  { %v91_v39 = vsel %vm87_vm2, %v75_v30, %v90_v36  ;;  %v94_v40 = vsel %vm88_vm4, %v81_v32, 920167782  ;;  %v98_v41 = vsel %vm88_vm4, %v84_v33, 1326507024  ;;  %v169_v53 = vshrl.u32 %v168_v34, 5 }
  0xab   :  { %v95_v43 = vsel %vm87_vm2, %v78_v31, %v94_v40  ;;  %v99_v44 = vsel %vm87_vm2, %v81_v32, %v98_v41  ;;  %v92_v46 = vsel %vm86_vm5, %v89_v35, %v91_v39  ;;  %v171_v56 = vsub.s32 32, %v170_v45 }
  0xac   :  { %v96_v47 = vsel %vm86_vm5, %v93_v37, %v95_v43  ;;  %v100_v48 = vsel %vm86_vm5, %v97_v38, %v99_v44  ;;  %v108_v58 = vmul.u32 %v702_v7, %v92_v46  ;;  %v173_v60 = vshll.u32 %v634_v9, %v170_v45 }
  0xad   :  { %v715_v49 = vmul.u32.u64.low %v702_v7, %v100_v48  ;;  %v716_v50 = vmul.u32.u64.high %v702_v7, %v100_v48, %v715_v49  ;;  %v719_v51 = vmul.u32.u64.low %v702_v7, %v96_v47  ;;  %v720_v52 = vmul.u32.u64.high %v702_v7, %v96_v47, %v719_v51 }
  0xae   :  { %v176_v61 = vshll.u32 %v635_v13, %v170_v45  ;;  %v179_v62 = vshll.u32 %v636_v16, %v170_v45  ;;  %v174_v63 = vshrl.u32 %v635_v13, %v171_v56  ;;  %v177_v0 = vshrl.u32 %v636_v16, %v171_v56 }
  0xaf   :  { %v180_v1 = vshrl.u32 %v637_v18, %v171_v56  ;;  %v182_v3 = vshll.u32 %v637_v18, %v170_v45  ;;  %vm110_vm6 = vc.u32 %v716_v50, %v719_v51  ;;  %v111_v4 = vadd.s32 1, %v720_v52 }
  0xb0   :  { %v183_v5 = vshrl.u32 %v638_v20, %v171_v56  ;;  %v185_v6 = vshll.u32 %v638_v20, %v170_v45  ;;  %v175_v8 = vor.u32 %v174_v63, %v173_v60  ;;  %v178_v10 = vor.u32 %v177_v0, %v176_v61 }
  0xb1   :  { %v181_v11 = vor.u32 %v180_v1, %v179_v62  ;;  %v186_v12 = vshrl.u32 %v639_v27, %v171_v56  ;;  %v112_v7 = vsel %vm110_vm6, %v111_v4, %v720_v52  ;;  %vm188_vm7 = vcmp.lt.s32.totalorder %v169_v53, 1 }
  0xb2   :  { %v184_v14 = vor.u32 %v183_v5, %v182_v3  ;;  %vm191_vm8 = vcmp.lt.s32.totalorder %v169_v53, 4  ;;  %v113_v13 = vadd.s32 %v112_v7, %v108_v58  ;;  %vm190_vm9 = vcmp.lt.s32.totalorder %v169_v53, 3 }
  0xb3   :  { %v187_v16 = vor.u32 %v186_v12, %v185_v6  ;;  %v193_v17 = vsel %vm191_vm8, %v181_v11, 2102212464  ;;  %v172_v18 = vshrl.u32 %v634_v9, %v171_v56  ;;  %v196_v19 = vsel %vm188_vm7, %v175_v8, %v178_v10 }
  0xb4   :  { %v197_v21 = vsel %vm191_vm8, %v184_v14, 920167782  ;;  %v200_v22 = vsel %vm188_vm7, %v178_v10, %v181_v11  ;;  %v114_v23 = vadd.s32 536870912, %v113_v13  ;;  %vm189_vm10 = vcmp.lt.s32.totalorder %v169_v53, 2 }
  0xb5   :  { %v198_v20 = vsel %vm190_vm9, %v181_v11, %v197_v21  ;;  %v201_v24 = vsel %vm191_vm8, %v187_v16, 1326507024  ;;  %v192_v25 = vsel %vm188_vm7, %v172_v18, %v175_v8  ;;  %v194_v26 = vsel %vm190_vm9, %v178_v10, %v193_v17 }
  0xb6   :  { %v199_v27 = vsel %vm189_vm10, %v196_v19, %v198_v20  ;;  %v202_v28 = vsel %vm190_vm9, %v184_v14, %v201_v24  ;;  %v115_v29 = vshrl.u32 %v114_v23, 30  ;;  %v195_v35 = vsel %vm189_vm10, %v192_v25, %v194_v26 }
  0xb7   :  { %v203_v30 = vsel %vm189_vm10, %v200_v22, %v202_v28  ;;  %v730_v31 = vmul.u32.u64.low %v204_v57, %v199_v27  ;;  %v731_v32 = vmul.u32.u64.high %v204_v57, %v199_v27, %v730_v31  ;;  %v211_v38 = vmul.u32 %v204_v57, %v195_v35 }
  0xb8   :  { %v733_v33 = vmul.u32.u64.low %v204_v57, %v203_v30  ;;  %v734_v34 = vmul.u32.u64.high %v204_v57, %v203_v30, %v733_v33  ;;  %v116_v9 = vshll.u32 %v115_v29, 30  ;;  %v109_v52 = vadd.s32 %v719_v51, %v716_v50 }
  0xb9   :  { %v214_v37 = vadd.s32 1, %v731_v32  ;;  %v139_v17 = vsub.s32 4, %v115_v29  ;;  %vm752_vm1 = vcmp.le.f32.partialorder %v156_v2, 0.7853982  ;;  %vm313_vm5 = vcmask 523264  }
  0xba   :  { %v117_v36 = vsub.s32 %v113_v13, %v116_v9  ;;  %vm213_vm11 = vc.u32 %v734_v34, %v730_v31  ;;  %v212_v11 = vadd.s32 %v730_v31, %v734_v34  ;;  %vm145_vm6 = vweird.f32 %v692_v54 }
  0xbb   :  { %v215_v40 = vsel %vm213_vm11, %v214_v37, %v731_v32  ;;  %v140_v23 = vsel %vm55_vm14, %v139_v17, %v115_v29  ;;  %vm248_vm10 = vweird.f32 %v696_v59 }
  0xbc   :  { %v119_v39 = vsub.s32 0, %v117_v36  ;;  %v216_v41 = vadd.s32 %v215_v40, %v211_v38  ;;  %v142_v26 = vsel %vm54_vm15, 0, %v140_v23 }
  0xbd   :  { %v146_v28 = vand.u32 3, %v142_v26 }
  0xbe   :  { %v509_v42 = vmin.u32 %v119_v39, %v117_v36  ;;  %v217_v43 = vadd.s32 536870912, %v216_v41 }
  0xbf   :  { %vm151_vm2 = vcmp.eq.s32.totalorder %v146_v28, 2  ;;  %vm148_vm3 = vcmp.eq.s32.totalorder %v146_v28, 0  ;;  %vm147_vm4 = vcmp.lt.s32.totalorder %v146_v28, 2 }
  0xc0   :  { %v121_v44 = vclz %v509_v42  ;;  %v739_v45 = vshrl.u32 %v217_v43, 30 }
  0xc2   :  { %v510_v46 = vadd.s32 4294967294, %v121_v44  ;;  %v219_v47 = vshll.u32 %v739_v45, 30  ;;  %v242_v31 = vsub.s32 4, %v739_v45 }
  0xc4   :  { %vm511_vm12 = vcmp.lt.s32.totalorder %v510_v46, 0  ;;  %v220_v49 = vsub.s32 %v216_v41, %v219_v47  ;;  %v243_v2 = vsel %vm158_vm0, %v242_v31, %v739_v45 }
  0xc5   :  { %v124_v48 = vsel %vm511_vm12, 0, %v510_v46  ;;  %v245_v39 = vsel %vm752_vm1, 0, %v243_v2 }
  0xc6   :  { %v125_v53 = vsub.s32 32, %v124_v48  ;;  %v129_v56 = vsub.s32 4294967266, %v124_v48  ;;  %v222_v57 = vsub.s32 0, %v220_v49  ;;  %v126_v58 = vshll.u32 %v117_v36, %v124_v48 }
  0xc7   :  { %v249_v40 = vand.u32 3, %v245_v39  ;;  %v293_v48 = vlaneseq }
  0xc8   :  { %v127_v60 = vshrl.u32 %v109_v52, %v125_v53  ;;  %v130_v61 = vadd.s32 127, %v129_v56  ;;  %v513_v62 = vmin.u32 %v222_v57, %v220_v49  ;;  %v291_v53 = vld [vmem:[%s792_s3] sm:$0xf]  ;;  %s640_s3 = smov [#allocation5]  }
  0xc9   :  { %vm254_vm7 = vcmp.eq.s32.totalorder %v249_v40, 2  ;;  %vm251_vm8 = vcmp.eq.s32.totalorder %v249_v40, 0  ;;  %vm250_vm9 = vcmp.lt.s32.totalorder %v249_v40, 2  ;;  %s495_s8 = sshll.u32 %s640_s3, 4  ;;  %s496_s8 = int_to_ptr.vmem [resolvable:$true] %s495_s8 }
  0xca   :  { %v128_v63 = vor.u32 %v127_v60, %v126_v58  ;;  %v131_v0 = vshll.u32 %v130_v61, 23  ;;  %v224_v1 = vclz %v513_v62  ;;  %s603_s9 = scalar_lea.vmem %s496_s8, 1024  ;;  %p608_p9 = scmp.lt.s32.totalorder %s496_s8, %s496_s8 }
  0xcb   :  { %p604_p8 = scmp.ne.s32.totalorder %s496_s8, %s603_s9  ;;  %p609_p10 = scmp.lt.s32.totalorder %s603_s9, %s603_s9 }
  0xcc   :  { %v132_v3 = vor.u32 4788187, %v131_v0  ;;  %v514_v4 = vadd.s32 4294967294, %v224_v1  ;;  %v135_v6 = vcvt.s32.f32 %v128_v63 }
  0xcd   :  { %p610_p11 = por %p609_p10, %p608_p9 }
  0xce   :  { %v133_v5 = vand.u32 2147483647, %v132_v3  ;;  %vm515_vm13 = vcmp.lt.s32.totalorder %v514_v4, 0 }
  0xcf   :  { %v227_v10 = vsel %vm515_vm13, 0, %v514_v4  ;;  %p611_p12 = pnand %p610_p11, %p604_p8 }
  0xd0   :  { %v136_v8 = vmul.f32 %v135_v6, %v133_v5  ;;  %v228_v50 = vsub.s32 32, %v227_v10  ;;  %v232_v51 = vsub.s32 4294967266, %v227_v10  ;;  %v229_v7 = vshll.u32 %v220_v49, %v227_v10 }
  0xd2   :  { %v137_v12 = vxor.u32 2147483648, %v136_v8  ;;  %v230_v14 = vshrl.u32 %v212_v11, %v228_v50  ;;  %v233_v13 = vadd.s32 127, %v232_v51 }
  0xd4   :  { %v138_v16 = vsel %vm55_vm14, %v137_v12, %v136_v8  ;;  %v231_v18 = vor.u32 %v230_v14, %v229_v7  ;;  %v234_v19 = vshll.u32 %v233_v13, 23 }
  0xd5   :  { %v141_v21 = vsel %vm54_vm15, %v692_v54, %v138_v16 }
  0xd6   :  { %573 = vcosq.f32 %v141_v21  ;;  %v235_v22 = vor.u32 4788187, %v234_v19  ;;  %v238_v24 = vcvt.s32.f32 %v231_v18 }
  0xd7   :  { %575 = vsinq.f32 %v141_v21 }
  0xd8   :  { %v236_v20 = vand.u32 2147483647, %v235_v22 }
  0xda   :  { %v239_v25 = vmul.f32 %v238_v24, %v236_v20 }
  0xdc   :  { %v240_v27 = vxor.u32 2147483648, %v239_v25 }
  0xde   :  { %v241_v30 = vsel %vm158_vm0, %v240_v27, %v239_v25 }
  0xdf   :  { %v244_v29 = vsel %vm752_vm1, %v696_v59, %v241_v30 }
  0xe0   :  { %v574_v32 = vpop.eup %573  ;;  %577 = vcosq.f32 %v244_v29 }
  0xe1   :  { %v576_v33 = vpop.eup %575  ;;  %v152_v34 = vxor.u32 2147483648, %v574_v32  ;;  %579 = vsinq.f32 %v244_v29 }
  0xe2   :  { %v149_v9 = vxor.u32 2147483648, %v576_v33 }
  0xe3   :  { %v153_v35 = vsel %vm151_vm2, %v152_v34, %v576_v33 }
  0xe4   :  { %v150_v36 = vsel %vm148_vm3, %v574_v32, %v149_v9 }
  0xe5   :  { %v154_v37 = vsel %vm147_vm4, %v150_v36, %v153_v35 }
  0xe6   :  { %v155_v38 = vsel %vm145_vm6, nan, %v154_v37 }
  0xe7   :  { %516 = vmatmul.mubr.msk.f32.vlgmr.msra.gmra.mrb[0].mxu0 %vm313_vm5, %v155_v38  ;;  %518 = vmatmul.mubr.msk.f32.vlgmr.msra.gmra.mrb[0].mxu1 %vm313_vm5, %v155_v38 }
  0xe8   :  { %390 = vmatprep.mubr.f32.mxu0 %v633_v15  ;;  %467 = vmatprep.mubr.f32.mxu1 %v633_v15  ;;  %v294_v15 = vshrl.u32 %v293_v48, 7 }
  0xea   :  { %v578_v41 = vpop.eup %577  ;;  %v295_v49 = vsub.s32 0, %v294_v15  ;;  %v303_v52 = vsub.s32 2, %v294_v15  ;;  %v299_v56 = vsub.s32 1, %v294_v15  ;;  %v307_v57 = vsub.s32 3, %v294_v15 }
  0xeb   :  { %v580_v42 = vpop.eup %579  ;;  %v255_v43 = vxor.u32 2147483648, %v578_v41 }
  0xec   :  { %v252_v44 = vxor.u32 2147483648, %v580_v42  ;;  %v296_v58 = vrot.slane %v291_v53, %v295_v49  ;;  %v304_v60 = vrot.slane %v291_v53, %v303_v52  ;;  %v300_v61 = vrot.slane %v291_v53, %v299_v56 }
  0xed   :  { %v256_v54 = vsel %vm254_vm7, %v255_v43, %v580_v42  ;;  %v308_v59 = vrot.slane %v291_v53, %v307_v57 }
  0xee   :  { %v253_v45 = vsel %vm251_vm8, %v578_v41, %v252_v44 }
  0xef   :  { %v257_v46 = vsel %vm250_vm9, %v253_v45, %v256_v54 }
  0xf0   :  { %v258_v47 = vsel %vm248_vm10, nan, %v257_v46 }
  0xf1   :  { %517 = vmatmul.mubr.msk.f32.gmra.mrb[2].mxu0 %vm313_vm5, %v258_v47  ;;  %519 = vmatmul.mubr.msk.f32.gmra.mrb[2].mxu1 %vm313_vm5, %v258_v47 }
 0x1ba   :  { %v386_v62 = vpop.f32.mrb[0].mxu0  ;;  %v463_v63 = vpop.f32.mrb[0].mxu1 }
 0x1bb   :  { %v387_v0 = vadd.f32 %v386_v62, %v296_v58  ;;  %v464_v1 = vadd.f32 %v463_v63, %v304_v60  ;;  %v388_v3 = vpop.f32.mrb[1].mxu0  ;;  %v465_v4 = vpop.f32.mrb[1].mxu1 }
 0x1bc   :  { %v389_v5 = vadd.f32 %v388_v3, %v300_v61  ;;  %v466_v6 = vadd.f32 %v465_v4, %v308_v59 }
 0x1bd   :  { %v474_v8 = vmax.f32 %v387_v0, 0.0  ;;  %v476_v10 = vmax.f32 %v464_v1, 0.0 }
 0x1be   :  { %v475_v11 = vmax.f32 %v389_v5, 0.0  ;;  %v477_v50 = vmax.f32 %v466_v6, 0.0 }
 0x1bf   :  { %482 = vst [vmem:[#allocation5] sm:$0xff] %v474_v8  ;;  %484 = vst [vmem:[#allocation5 + $0x10] sm:$0xff] %v476_v10 }
 0x1c0   :  { %483 = vst [vmem:[#allocation5 + $0x8] sm:$0xff] %v475_v11  ;;  %485 = vst [vmem:[#allocation5 + $0x18] sm:$0xff] %v477_v50 }
 0x1c4   :  { %v392_v51 = vpop.f32.mrb[2].mxu0  ;;  %v469_v12 = vpop.f32.mrb[2].mxu1 }
 0x1c5   :  { %v393_v7 = vadd.f32 %v392_v51, %v296_v58  ;;  %v470_v14 = vadd.f32 %v469_v12, %v304_v60  ;;  %v394_v13 = vpop.f32.mrb[3].mxu0  ;;  %v471_v16 = vpop.f32.mrb[3].mxu1 }
 0x1c6   :  { %v395_v17 = vadd.f32 %v394_v13, %v300_v61  ;;  %v472_v18 = vadd.f32 %v471_v16, %v308_v59 }
 0x1c7   :  { %v478_v19 = vmax.f32 %v393_v7, 0.0  ;;  %v480_v21 = vmax.f32 %v470_v14, 0.0 }
 0x1c8   :  { %v479_v22 = vmax.f32 %v395_v17, 0.0  ;;  %v481_v23 = vmax.f32 %v472_v18, 0.0 }
 0x1c9   :  { %486 = vst [vmem:[#allocation5 + $0x20] sm:$0xff] %v478_v19  ;;  %488 = vst [vmem:[#allocation5 + $0x30] sm:$0xff] %v480_v21 }
 0x1ca   :  { %487 = vst [vmem:[#allocation5 + $0x28] sm:$0xff] %v479_v22  ;;  %489 = vst [vmem:[#allocation5 + $0x38] sm:$0xff] %v481_v23 }
 0x1cb   :  { %614 = shalt.err (!%p611_p12)
}
 0x1cc   :  { %s615_s12 = scalar_lea.hbm %s793_s4, 1024 }
 0x1cd   :  { %p616_p13 = scmp.ne.s32.totalorder %s793_s4, %s615_s12  ;;  %p619_p0 = scmp.lt.u32.totalorder %s615_s12, %s793_s4 }
 0x1cf   :  { %p621_p1 = pnand %p619_p0, %p616_p13 }
 0x1d1   :  { %624 = shalt.err (!%p621_p1)
}
 0x1d2   :  { %501 = dma.vmem_to_hbm [thread:$0]  %s496_s8, 1024, %s793_s4, [#allocation4], %s630_s25, %s630_s25, %s631_s26  }
 0x1d3   :  { %627 = dma.done.wait [#allocation4], 1024  }
 0x1d4   :  { %628 = vsyncadd [#allocation4], 4294966272 }
 0x1d5   :  { %505 = vsyncpa [#allocation3], 1 }
 0x1d6   :  { %506 = vsyncpa [#allocation4], 1 }

</bundles_post_ra>
